<compile_context>
chip_gen: v6e
topology: v6e:2x2x1
jax: 0.10.0
libtpu: 0.0.40
codegen_flags: <defaults>
</compile_context>

<pallas_src>
import jax
import jax.numpy as jnp
from jax.experimental import pallas as pl
from jax.experimental.pallas import tpu as pltpu


def _num_model_kernel(x0_ref, x1_ref, w1a_ref, w1b_ref, b1_ref, w2_ref, b2_ref, o_ref):
    # Layer 1 on packed rows: each VMEM row holds P batch elements side by side
    # along lanes; the block-diagonal weights keep them independent.
    h = jnp.dot(x0_ref[...], w1a_ref[...], preferred_element_type=jnp.float32)
    h = h + jnp.dot(x1_ref[...], w1b_ref[...], preferred_element_type=jnp.float32)
    h = jnp.maximum(h + b1_ref[...].astype(jnp.float32), 0.0)
    # Layer 2 (D -> 1) as a segmented reduce: block-diagonal w2 of shape
    # (P*D, P) sums each D-lane segment into its own output column.
    out = jnp.dot(h, w2_ref[...].astype(jnp.float32),
                  preferred_element_type=jnp.float32)
    o_ref[...] = (out + b2_ref[0, 0]).astype(o_ref.dtype)


def num_model_forward(x0, x1, w1, b1, w2, b2, *, block_b=None, core_parallel=False):
    """x0, x1: (B, D). w1: (2D, D), b1: (D,), w2: (D, 1), b2: (1,). Returns (B,) f32.

    core_parallel=True is a v7x knob: shards the batch grid axis across the
    chip's two TensorCores via CORE_PARALLEL dimension semantics.
    """
    B, D = x0.shape
    assert x1.shape == (B, D)
    assert w1.shape == (2 * D, D) and b1.shape == (D,)
    assert w2.shape == (D, 1) and b2.shape == (1,)

    # Lane-packing factor: P batch rows share one 128-lane VMEM row.
    if D <= 128 and 128 % D == 0:
        P = 128 // D
    else:
        P = 1  # TODO(synk): lane-packing for D that does not divide 128.
    PD = P * D
    unit = 8 * P  # batch-tile granularity: packed rows must be sublane aligned

    # Pad awkward batch sizes up to the tile granularity; tail is sliced off.
    Bp = ((B + unit - 1) // unit) * unit
    if Bp != B:
        pad = Bp - B
        x0 = jnp.pad(x0, ((0, pad), (0, 0)))
        x1 = jnp.pad(x1, ((0, pad), (0, 0)))

    # Batch tile: largest aligned divisor of Bp under the cap.  Footprint is
    # ~0.75 KiB per batch row (2 packed inputs + padded output, double
    # buffered), so the 16384-row cap is ~12 MiB: fits v5e's 16-MiB scoped
    # default and leaves room on v6e/v7x (32-MiB scoped default).
    if block_b is None:
        cap = 16384
        block_b = unit
        d = unit
        lim = min(cap, Bp)
        while d <= lim:
            if Bp % d == 0:
                block_b = d
            d += unit
    assert block_b % unit == 0 and Bp % block_b == 0, (
        "block_b must be a multiple of 8*P and divide the padded batch")

    rows = Bp // P
    block_rows = block_b // P
    grid = (rows // block_rows,)

    # One-time parameter repacking (done in the wrapper, tiny).
    wdt = w1.dtype
    eye_p = jnp.eye(P, dtype=wdt)
    w1a_bd = jnp.kron(eye_p, w1[:D, :])                 # (PD, PD) block diagonal
    w1b_bd = jnp.kron(eye_p, w1[D:, :])                 # (PD, PD) block diagonal
    b1_row = jnp.tile(b1.reshape(1, D), (1, P))          # (1, PD)
    w2_seg = jnp.kron(eye_p, w2)                         # (PD, P) segmented reduce
    b2_s = b2.reshape(1, 1).astype(jnp.float32)          # SMEM scalar

    # Free, contiguous row-major reshapes: (Bp, D) -> (Bp//P, P*D).
    x0p = x0.reshape(rows, PD)
    x1p = x1.reshape(rows, PD)

    dim_sem = (pltpu.CORE_PARALLEL,) if core_parallel else ("parallel",)

    out = pl.pallas_call(
        _num_model_kernel,
        out_shape=jax.ShapeDtypeStruct((rows, P), jnp.float32),
        grid=grid,
        in_specs=[
            pl.BlockSpec((block_rows, PD), lambda i: (i, 0)),   # x0 packed tile
            pl.BlockSpec((block_rows, PD), lambda i: (i, 0)),   # x1 packed tile
            pl.BlockSpec((PD, PD), lambda i: (0, 0)),           # W1a block-diag (resident)
            pl.BlockSpec((PD, PD), lambda i: (0, 0)),           # W1b block-diag (resident)
            pl.BlockSpec((1, PD), lambda i: (0, 0)),            # b1 tiled row
            pl.BlockSpec((PD, P), lambda i: (0, 0)),            # w2 segmented
            pl.BlockSpec(memory_space=pltpu.MemorySpace.SMEM),  # b2 scalar
        ],
        out_specs=pl.BlockSpec((block_rows, P), lambda i: (i, 0)),
        compiler_params=pltpu.CompilerParams(
            dimension_semantics=dim_sem,
            vmem_limit_bytes=32 * 1024 * 1024,
        ),
    )(x0p, x1p, w1a_bd, w1b_bd, b1_row, w2_seg, b2_s)

    # (rows, P) -> (Bp,) is a free row-major reshape; drop the padded tail.
    return out.reshape(Bp)[:B]


def _reference(x0, x1, w1, b1, w2, b2):
    h = jnp.maximum(jnp.concatenate([x0, x1], axis=-1) @ w1 + b1, 0.0)
    return jnp.squeeze(h @ w2 + b2, axis=-1)


if __name__ == "__main__":
    key = jax.random.PRNGKey(0)

    checks = [
        dict(B=256, D=32, block_b=64),    # packed path (P=4), 4-step pipelined grid
        dict(B=200, D=32, block_b=None),  # awkward batch -> padded tail path
        dict(B=16, D=40, block_b=None),   # D does not divide 128 -> P=1 fallback
    ]

    for cfg in checks:
        B, D, block_b = cfg["B"], cfg["D"], cfg["block_b"]
        key, k0, k1, kw1, kb1, kw2, kb2 = jax.random.split(key, 7)
        x0 = jax.random.normal(k0, (B, D), dtype=jnp.float32)
        x1 = jax.random.normal(k1, (B, D), dtype=jnp.float32)
        w1 = jax.random.normal(kw1, (2 * D, D), dtype=jnp.float32) * 0.05
        b1 = jax.random.normal(kb1, (D,), dtype=jnp.float32) * 0.05
        w2 = jax.random.normal(kw2, (D, 1), dtype=jnp.float32) * 0.05
        b2 = jax.random.normal(kb2, (1,), dtype=jnp.float32) * 0.05

        out = num_model_forward(x0, x1, w1, b1, w2, b2, block_b=block_b)
        out = jax.block_until_ready(out)

        ref = _reference(x0, x1, w1, b1, w2, b2)
        assert out.shape == (B,), (out.shape, B)
        err = float(jnp.max(jnp.abs(out - ref)))
        assert jnp.allclose(out, ref, atol=1e-5, rtol=1e-5), (cfg, err)

    print("KERNEL_OK")
</pallas_src>

<mosaic_0001>
module attributes {stable_mosaic.version = 11 : i64} {
  func.func @_num_model_kernel(%arg0: i32, %arg1: memref<16x128xf32, #tpu.memory_space<vmem>>, %arg2: memref<16x128xf32, #tpu.memory_space<vmem>>, %arg3: memref<128x128xf32, #tpu.memory_space<vmem>>, %arg4: memref<128x128xf32, #tpu.memory_space<vmem>>, %arg5: memref<1x128xf32, #tpu.memory_space<vmem>>, %arg6: memref<128x4xf32, #tpu.memory_space<vmem>>, %arg7: memref<1x1xf32, #tpu.memory_space<smem>>, %arg8: memref<16x4xf32, #tpu.memory_space<vmem>>) attributes {dimension_semantics = [#tpu.dimension_semantics<parallel>], iteration_bounds = array<i64: 4>, scalar_prefetch = 0 : i64, scratch_operands = 0 : i64, tpu.core_type = #tpu.core_type<tc>, window_params = [{transform_indices = @transform_0, window_bounds = array<i64: 16, 128>}, {transform_indices = @transform_1, window_bounds = array<i64: 16, 128>}, {pipeline_mode = #tpu.pipeline_mode<synchronous>, transform_indices = @transform_2, window_bounds = array<i64: 128, 128>}, {pipeline_mode = #tpu.pipeline_mode<synchronous>, transform_indices = @transform_3, window_bounds = array<i64: 128, 128>}, {pipeline_mode = #tpu.pipeline_mode<synchronous>, transform_indices = @transform_4, window_bounds = array<i64: 1, 128>}, {pipeline_mode = #tpu.pipeline_mode<synchronous>, transform_indices = @transform_5, window_bounds = array<i64: 128, 4>}, {transform_indices = @transform_6, window_bounds = array<i64: 1, 1>}, {transform_indices = @transform_7, window_bounds = array<i64: 16, 4>}]} {
    %c0 = arith.constant 0 : index
    %c0_0 = arith.constant 0 : index
    %0 = vector.load %arg1[%c0, %c0_0] : memref<16x128xf32, #tpu.memory_space<vmem>>, vector<16x128xf32>
    %c0_1 = arith.constant 0 : index
    %c0_2 = arith.constant 0 : index
    %1 = vector.load %arg3[%c0_1, %c0_2] : memref<128x128xf32, #tpu.memory_space<vmem>>, vector<128x128xf32>
    %cst = arith.constant dense<0.000000e+00> : vector<16x128xf32>
    %2 = tpu.matmul %0, %1, %cst {dimension_numbers = #tpu.dot_dimension_numbers<[1], [0], [0], [1], [0, 0, 1, 1], [], []>} : vector<16x128xf32>, vector<128x128xf32>, vector<16x128xf32> -> vector<16x128xf32>
    %c0_3 = arith.constant 0 : index
    %c0_4 = arith.constant 0 : index
    %3 = vector.load %arg2[%c0_3, %c0_4] : memref<16x128xf32, #tpu.memory_space<vmem>>, vector<16x128xf32>
    %c0_5 = arith.constant 0 : index
    %c0_6 = arith.constant 0 : index
    %4 = vector.load %arg4[%c0_5, %c0_6] : memref<128x128xf32, #tpu.memory_space<vmem>>, vector<128x128xf32>
    %cst_7 = arith.constant dense<0.000000e+00> : vector<16x128xf32>
    %5 = tpu.matmul %3, %4, %cst_7 {dimension_numbers = #tpu.dot_dimension_numbers<[1], [0], [0], [1], [0, 0, 1, 1], [], []>} : vector<16x128xf32>, vector<128x128xf32>, vector<16x128xf32> -> vector<16x128xf32>
    %6 = arith.addf %2, %5 : vector<16x128xf32>
    %c0_8 = arith.constant 0 : index
    %c0_9 = arith.constant 0 : index
    %7 = vector.load %arg5[%c0_8, %c0_9] : memref<1x128xf32, #tpu.memory_space<vmem>>, vector<1x128xf32>
    %8 = vector.broadcast %7 : vector<1x128xf32> to vector<16x128xf32>
    %9 = arith.addf %6, %8 : vector<16x128xf32>
    %cst_10 = arith.constant 0.000000e+00 : f32
    %10 = vector.broadcast %cst_10 : f32 to vector<16x128xf32>
    %11 = arith.maximumf %9, %10 : vector<16x128xf32>
    %c0_11 = arith.constant 0 : index
    %c0_12 = arith.constant 0 : index
    %12 = vector.load %arg6[%c0_11, %c0_12] : memref<128x4xf32, #tpu.memory_space<vmem>>, vector<128x4xf32>
    %cst_13 = arith.constant dense<0.000000e+00> : vector<16x4xf32>
    %13 = tpu.matmul %11, %12, %cst_13 {dimension_numbers = #tpu.dot_dimension_numbers<[1], [0], [0], [1], [0, 0, 1, 1], [], []>} : vector<16x128xf32>, vector<128x4xf32>, vector<16x4xf32> -> vector<16x4xf32>
    %c0_14 = arith.constant 0 : index
    %c0_15 = arith.constant 0 : index
    %14 = memref.load %arg7[%c0_14, %c0_15] : memref<1x1xf32, #tpu.memory_space<smem>>
    %15 = vector.broadcast %14 : f32 to vector<16x4xf32>
    %16 = arith.addf %13, %15 : vector<16x4xf32>
    %c0_16 = arith.constant 0 : index
    %c0_17 = arith.constant 0 : index
    %17 = vector.load %arg8[%c0_16, %c0_17] : memref<16x4xf32, #tpu.memory_space<vmem>>, vector<16x4xf32>
    tpu.vector_store %arg8[%c0_16, %c0_17], %16 {strides = array<i32>} : memref<16x4xf32, #tpu.memory_space<vmem>>, vector<16x4xf32>,
    return
  }
  func.func @transform_0(%arg0: i32) -> (i32, i32) {
    %c0_i32 = arith.constant 0 : i32
    %c0_i32_0 = arith.constant 0 : i32
    return %arg0, %c0_i32 : i32, i32
  }
  func.func @transform_1(%arg0: i32) -> (i32, i32) {
    %c0_i32 = arith.constant 0 : i32
    %c0_i32_0 = arith.constant 0 : i32
    return %arg0, %c0_i32 : i32, i32
  }
  func.func @transform_2(%arg0: i32) -> (i32, i32) {
    %c0_i32 = arith.constant 0 : i32
    %c0_i32_0 = arith.constant 0 : i32
    %c0_i32_1 = arith.constant 0 : i32
    return %c0_i32, %c0_i32_0 : i32, i32
  }
  func.func @transform_3(%arg0: i32) -> (i32, i32) {
    %c0_i32 = arith.constant 0 : i32
    %c0_i32_0 = arith.constant 0 : i32
    %c0_i32_1 = arith.constant 0 : i32
    return %c0_i32, %c0_i32_0 : i32, i32
  }
  func.func @transform_4(%arg0: i32) -> (i32, i32) {
    %c0_i32 = arith.constant 0 : i32
    %c0_i32_0 = arith.constant 0 : i32
    %c0_i32_1 = arith.constant 0 : i32
    return %c0_i32, %c0_i32_0 : i32, i32
  }
  func.func @transform_5(%arg0: i32) -> (i32, i32) {
    %c0_i32 = arith.constant 0 : i32
    %c0_i32_0 = arith.constant 0 : i32
    %c0_i32_1 = arith.constant 0 : i32
    return %c0_i32, %c0_i32_0 : i32, i32
  }
  func.func @transform_6(%arg0: i32) -> (i32, i32) {
    %c0_i32 = arith.constant 0 : i32
    %c0_i32_0 = arith.constant 0 : i32
    %c0_i32_1 = arith.constant 0 : i32
    return %c0_i32, %c0_i32_0 : i32, i32
  }
  func.func @transform_7(%arg0: i32) -> (i32, i32) {
    %c0_i32 = arith.constant 0 : i32
    %c0_i32_0 = arith.constant 0 : i32
    return %arg0, %c0_i32 : i32, i32
  }
}

</mosaic_0001>

<bundles_post_ra>
// kernel: tpu_custom_call.1
= control target key start
LH: loop header
LB: loop body
LE: loop exit
PB: predicated region body
PF: predicated region fallthrough
CT: control target
= control target key end

     0   :  { %s1450_s0 = inlined_call_operand.hbm [shape: f32[64,128], index: 0, kind: input, shape index: {}]   ;;  %s1451_s1 = inlined_call_operand.hbm [shape: f32[64,128], index: 1, kind: input, shape index: {}]   ;;  %s1452_s2 = inlined_call_operand.vmem [shape: f32[128,128], index: 2, kind: input, shape index: {}]   ;;  %s1453_s3 = inlined_call_operand.hbm [shape: f32[128,128], index: 3, kind: input, shape index: {}]   ;;  %s1454_s4 = inlined_call_operand.vmem [shape: f32[1,128], index: 4, kind: input, shape index: {}]   ;;  %s1455_s5 = inlined_call_operand.vmem [shape: f32[128,4], index: 5, kind: input, shape index: {}]   ;;  %s1456_s6 = inlined_call_operand.<no memory space> [shape: f32[1,1], index: 6, kind: input, shape index: {}]   ;;  %s1457_s7 = inlined_call_operand.vmem [shape: f32[64,4], index: 7, kind: output, shape index: {}]  }
   0x1   :  { %12 = sst [smem:[#allocation2]] %s1456_s6 }
   0x2   :  { %13 = vsyncpa [#allocation4], 0 }
   0x3   :  { %15 = vsyncpa [#allocation4 + $0x1], 0 }
   0x4   :  { %16 = vsyncpa [#allocation6], 0 }
   0x5   :  { %18 = vsyncpa [#allocation6 + $0x1], 0  ;;  %s1161_s26 = smov 0   ;;  %s1163_s27 = smov 0  }
   0x6   :  { %s1165_s28 = smov 0   ;;  %s1167_s29 = smov 0  }
   0x7 LB: > { %s1180_s6 = sadd.s32 4294967295, %s1111_s29   ;;  %p44_p0 = scmp.ne.s32.totalorder %s1103_s27, %s1099_s26  ;;  %s1111_s29 = sphi %s1167_s29, %s1473_s29   ;;  %s1107_s28 = sphi %s1165_s28, %s1472_s28   ;;  %s1103_s27 = sphi %s1163_s27, %s1471_s27   ;;  %s1099_s26 = sphi %s1161_s26, %s1470_s26  }
   0x8   : > { %p1460_p1 = scmp.eq.s32.totalorder %s1180_s6, 0  ;;  %p751_p2 = scmp.ge.s32.totalorder %s1111_s29, 1 }
   0x9   : > { %p212_p3 = scmp.lt.s32.totalorder %s1111_s29, 5  ;;  %s1113_s9 = smov [#allocation7]  }
   0xa   : > { %p1188_p4 = por %p1460_p1, %p44_p0  ;;  %s227_s10 = sshll.u32 %s1113_s9, 4  ;;  %s228_s10 = int_to_ptr.vmem [resolvable:$true] %s227_s10 }
   0xb   : > { %p1192_p5 = pnand %p751_p2, %p212_p3  ;;  %s1205_s12 = sadd.s32 1, %s1111_s29  }
   0xc   : > { %s1462_s30 = scalar_select %p1188_p4, 1, 0 }
   0xd   : > { %p938_p6 = pneg %p1192_p5  ;;  %s31_s13 = sadd.s32 1, %s1107_s28 }
   0xe   : > { %s28_s14 = ssub.s32 %s1111_s29, %s1205_s12  ;;  %s998_s15 = scalar_lea.vmem %s228_s10, 2048 }
   0xf   : > { %p1200_p7 = pnand %p938_p6, %p1460_p1  ;;  %p999_p9 = scmp.ne.s32.totalorder %s228_s10, %s998_s15 }
  0x10   : > { %p1006_p12 = scmp.lt.s32.totalorder %s228_s10, %s228_s10  ;;  %p1007_p13 = scmp.lt.s32.totalorder %s998_s15, %s998_s15 }
  0x11   : > { %p989_p8 = pneg %p1200_p7 }
  0x12   : > { %p1008_p0 = por %p1007_p13, %p1006_p12 }
  0x13   : > { %p1001_p10 = pnand %p999_p9, %p989_p8 }
  0x15   : > { %p1002_p11 = pneg %p1001_p10 }
  0x17   : > { %p1009_p2 = pnand %p1008_p0, %p1002_p11 }
  0x19   : > { %1012 = shalt.err (!%p1009_p2)
}
  0x1a   : > { %s1458_s16 = smov 128   ;;  %s1115_s17 = smov 8  }
  0x1b   : > { %941 = dma.hbm_to_vmem [thread:$0]  (!%p1200_p7), %s1453_s3, 2048, %s228_s10, [#allocation6], %s1458_s16, %s1458_s16, %s1115_s17  }
  0x1c   : > { %p29_p3 = scmp.eq.s32.totalorder %s28_s14, 0  ;;  %p38_p6 = scmp.ne.s32.totalorder %s1107_s28, %s1103_s27 }
  0x1d   : > { %p39_p8 = scmp.eq.s32.totalorder %s1111_s29, 0  ;;  %p950_p9 = scmp.lt.s32.totalorder %s1111_s29, 4 }
  0x1e   : > { %s1225_s20 = scalar_select %p29_p3, %s1107_s28, %s31_s13  }
  0x1f   : > { %p40_p10 = por %p39_p8, %p38_p6  ;;  %s250_s21 = sand.u32 1, %s1107_s28  }
  0x20   : > { %s754_s22 = sshll.u32 %s250_s21, 4  ;;  %s769_s23 = sshll.u32 %s1111_s29, 8 }
  0x21   : > { %s1232_s26 = scalar_lea.hbm %s1450_s0, %s769_s23  ;;  %s254_s9 = scalar_lea.vmem [#allocation3], %s754_s22 }
  0x22   : > { %s261_s10 = sshll.u32 %s254_s9, 4  ;;  %p1236_p7 = pnand %p950_p9, %p40_p10  ;;  %s1234_s10 = int_to_ptr.vmem [resolvable:$true] %s261_s10 }
  0x23   : > { %s1243_s15 = scalar_lea.hbm %s1451_s1, %s769_s23  ;;  %s275_s18 = scalar_lea.vmem [#allocation5], %s754_s22 }
  0x24   : > { %s1245_s19 = sshll.u32 %s275_s18, 4  ;;  %s1247_s24 = scalar_lea.sflag [#allocation4], %s250_s21  ;;  %s1278_s19 = int_to_ptr.vmem [resolvable:$true] %s1245_s19 }
  0x25   : > { %s1013_s25 = scalar_lea.hbm %s1232_s26, 256  ;;  %p1015_p12 = pneg %p1236_p7 }
  0x26   : > { %p1014_p11 = scmp.ne.s32.totalorder %s1232_s26, %s1013_s25  ;;  %s1018_s13 = scalar_lea.hbm %s1450_s0, 1024 }
  0x27   : > { %p1019_p2 = scmp.lt.s32.totalorder %s1232_s26, %s1450_s0  ;;  %p1020_p3 = scmp.lt.s32.totalorder %s1018_s13, %s1013_s25 }
  0x28   : > { %p1016_p13 = pnand %p1015_p12, %p1014_p11 }
  0x29   : > { %p1021_p6 = por %p1020_p3, %p1019_p2 }
  0x2a   : > { %p1017_p0 = pneg %p1016_p13 }
  0x2c   : > { %p1022_p8 = pnand %p1021_p6, %p1017_p0 }
  0x2e   : > { %1025 = shalt.err (!%p1022_p8)
}
  0x2f   : > { %s1026_s21 = scalar_lea.vmem %s1234_s10, 256  ;;  %s1116_s16 = smov [#allocation3]  }
  0x30   : > { %p1027_p9 = scmp.ne.s32.totalorder %s1234_s10, %s1026_s21  ;;  %s1031_s22 = sshll.u32 %s1116_s16, 4  ;;  %s1032_s22 = int_to_ptr.vmem [resolvable:$false] %s1031_s22 }
  0x31   : > { %s1033_s18 = scalar_lea.vmem %s1032_s22, 512  ;;  %p1034_p13 = scmp.lt.s32.totalorder %s1234_s10, %s1032_s22 }
  0x32   : > { %p1029_p10 = pnand %p1027_p9, %p1015_p12  ;;  %p1035_p1 = scmp.lt.s32.totalorder %s1033_s18, %s1026_s21 }
  0x34   : > { %p1030_p11 = pneg %p1029_p10  ;;  %p1036_p4 = por %p1035_p1, %p1034_p13 }
  0x36   : > { %p1037_p2 = pnand %p1036_p4, %p1030_p11 }
  0x38   : > { %1040 = shalt.err (!%p1037_p2)
}
  0x39   : > { %s1466_s25 = smov 128   ;;  %s271_s9 = sand.u32 1, %s1111_s29  }
  0x3a   : > { %945 = dma.hbm_to_vmem [thread:$0]  (!%p1236_p7), %s1232_s26, 256, %s1234_s10, %s1247_s24, %s1466_s25, %s1466_s25, %s1115_s17  }
  0x3b   : > { %s272_s13 = scalar_lea.sflag [#allocation6], %s271_s9  ;;  %s1041_s14 = scalar_lea.hbm %s1243_s15, 256 }
  0x3c   : > { %p1042_p1 = scmp.ne.s32.totalorder %s1243_s15, %s1041_s14  ;;  %s1046_s16 = scalar_lea.hbm %s1451_s1, 1024 }
  0x3d   : > { %p1047_p3 = scmp.lt.s32.totalorder %s1243_s15, %s1451_s1  ;;  %p1048_p6 = scmp.lt.s32.totalorder %s1046_s16, %s1041_s14 }
  0x3e   : > { %p1044_p4 = pnand %p1042_p1, %p1015_p12 }
  0x3f   : > { %p1049_p8 = por %p1048_p6, %p1047_p3 }
  0x40   : > { %p1045_p0 = pneg %p1044_p4 }
  0x42   : > { %p1050_p9 = pnand %p1049_p8, %p1045_p0 }
  0x44   : > { %1053 = shalt.err (!%p1050_p9)
}
  0x45   : > { %s1054_s29 = scalar_lea.vmem %s1278_s19, 256  ;;  %s1117_s26 = smov [#allocation5]  }
  0x46   : > { %p1055_p10 = scmp.ne.s32.totalorder %s1278_s19, %s1054_s29  ;;  %s1059_s10 = sshll.u32 %s1117_s26, 4  ;;  %s1060_s10 = int_to_ptr.vmem [resolvable:$false] %s1059_s10 }
  0x47   : > { %s1061_s24 = scalar_lea.vmem %s1060_s10, 512  ;;  %p1062_p2 = scmp.lt.s32.totalorder %s1278_s19, %s1060_s10 }
  0x48   : > { %p1057_p11 = pnand %p1055_p10, %p1015_p12  ;;  %p1063_p1 = scmp.lt.s32.totalorder %s1061_s24, %s1054_s29 }
  0x4a   : > { %p1058_p13 = pneg %p1057_p11  ;;  %p1064_p4 = por %p1063_p1, %p1062_p2 }
  0x4c   : > { %p1065_p3 = pnand %p1064_p4, %p1058_p13 }
  0x4e   : > { %1068 = shalt.err (!%p1065_p3)
}
  0x4f   : > { %948 = dma.hbm_to_vmem [thread:$0]  (!%p1236_p7), %s1243_s15, 256, %s1278_s19, %s272_s13, %s1466_s25, %s1466_s25, %s1115_s17  }
  0x50   : > { %294 = sbr.rel (%p1192_p5) target bundleno = 527 (0x20f), region = 48  ;;  %s296_s9 = sand.u32 (!%p1192_p5), 1, %s1103_s27  }
  0x51   : > { %s1309_s14 = sshll.u32 (!%p1192_p5), %s296_s9, 4  ;;  %s297_s23 = scalar_lea.sflag (!%p1192_p5), [#allocation4], %s296_s9 }
  0x52   : > { %s300_s21 = scalar_lea.vmem (!%p1192_p5), [#allocation3], %s1309_s14  ;;  %p1467_p12 = scmp.ne.s32.totalorder (!%p1192_p5), %s1462_s30, 0 }
  0x55   : > { %1086 = dma.done.wait (%p1467_p12), %s297_s23, 256  }
  0x56   : > { %1088 = vsyncadd (%p1467_p12), %s297_s23, 4294967040  ;;  %s305_s17 = sand.u32 1, %s1180_s6   ;;  %s309_s8 = scalar_lea.vmem [#allocation5], %s1309_s14 }
  0x57   : > { %s306_s11 = scalar_lea.sflag [#allocation6], %s305_s17 }
  0x58   : > { %1090 = dma.done.wait (%p1467_p12), %s306_s11, 256  }
  0x59   : > { %1092 = vsyncadd (%p1467_p12), %s306_s11, 4294967040  ;;  %p1468_p5 = scmp.eq.s32.totalorder %s1180_s6, 0 }
  0x5b   : > { %1094 = dma.done.wait (%p1468_p5), [#allocation6], 2048   ;;  %p1469_p7 = pmov %p1468_p5 }
  0x5c   : > { %v392_v0 = vld [vmem:[#allocation7 + $0x78] sm:$0xff]  ;;  %v391_v2 = vld [vmem:[#allocation7 + $0x70] sm:$0xff]  ;;  %v390_v4 = vld [vmem:[#allocation7 + $0x68] sm:$0xff]  ;;  %s764_s9 = sshll.u32 %s1180_s6, 1  ;;  %s570_s23 = sld [smem:[#allocation2]]  ;;  %vm647_vm0 = vcmask 31744  }
  0x5d   : > { %1096 = vsyncadd (%p1469_p7), [#allocation6], 4294965248  ;;  %v374_v1 = vld [vmem:[%s1452_s2 + $0x78] sm:$0xff]  ;;  %825 = vmatprep.subr.mxu0 %v392_v0  ;;  %v373_v3 = vld [vmem:[%s1452_s2 + $0x70] sm:$0xff]  ;;  %p352_p0 = scmp.lt.s32.totalorder %s764_s9, 7 }
  0x5e   : > { %860 = vmatprep.subr.mxu1 %v374_v1  ;;  %826 = vmatpush3.msra.mxu0 %v392_v0  ;;  %v372_v5 = vld [vmem:[%s1452_s2 + $0x68] sm:$0xff]  ;;  %v389_v6 = vld [vmem:[#allocation7 + $0x60] sm:$0xff]  ;;  %v388_v8 = vld [vmem:[#allocation7 + $0x58] sm:$0xff] }
  0x5f   : > { %861 = vmatpush3.msra.mxu1 %v374_v1  ;;  %827 = vmatprep.subr.mxu0 %v391_v2  ;;  %v371_v7 = vld [vmem:[%s1452_s2 + $0x60] sm:$0xff]  ;;  %v370_v9 = vld [vmem:[%s1452_s2 + $0x58] sm:$0xff]  ;;  %v387_v10 = vld [vmem:[#allocation7 + $0x50] sm:$0xff]  ;;  %s1475_s9 = smov (!%p352_p0, %s764_s9), 7 }
  0x60   : > { %862 = vmatprep.subr.mxu1 %v373_v3  ;;  %828 = vmatpush3.msra.mxu0 %v391_v2  ;;  %v369_v11 = vld [vmem:[%s1452_s2 + $0x50] sm:$0xff]  ;;  %v386_v12 = vld [vmem:[#allocation7 + $0x48] sm:$0xff]  ;;  %v385_v14 = vld [vmem:[#allocation7 + $0x40] sm:$0xff]  ;;  %s765_s17 = sshll.u32 %s1475_s9, 3 }
  0x61   : > { %863 = vmatpush3.msra.mxu1 %v373_v3  ;;  %829 = vmatprep.subr.mxu0 %v390_v4  ;;  %v368_v13 = vld [vmem:[%s1452_s2 + $0x48] sm:$0xff]  ;;  %v367_v15 = vld [vmem:[%s1452_s2 + $0x40] sm:$0xff]  ;;  %v384_v16 = vld [vmem:[#allocation7 + $0x38] sm:$0xff]  ;;  %s355_s19 = scalar_lea.vmem %s1457_s7, %s765_s17 }
  0x62   : > { %864 = vmatprep.subr.mxu1 %v372_v5  ;;  %830 = vmatpush3.msra.mxu0 %v390_v4  ;;  %v366_v17 = vld [vmem:[%s1452_s2 + $0x38] sm:$0xff]  ;;  %v383_v18 = vld [vmem:[#allocation7 + $0x30] sm:$0xff]  ;;  %v382_v20 = vld [vmem:[#allocation7 + $0x28] sm:$0xff]  ;;  %v571_v0 = vstv %s570_s23 }
  0x63   : > { %865 = vmatpush3.msra.mxu1 %v372_v5  ;;  %831 = vmatprep.subr.mxu0 %v389_v6  ;;  %v365_v19 = vld [vmem:[%s1452_s2 + $0x30] sm:$0xff]  ;;  %v364_v21 = vld [vmem:[%s1452_s2 + $0x28] sm:$0xff]  ;;  %v381_v22 = vld [vmem:[#allocation7 + $0x20] sm:$0xff] }
  0x64   : > { %866 = vmatprep.subr.mxu1 %v371_v7  ;;  %832 = vmatpush3.msra.mxu0 %v389_v6  ;;  %v363_v23 = vld [vmem:[%s1452_s2 + $0x20] sm:$0xff]  ;;  %v380_v24 = vld [vmem:[#allocation7 + $0x18] sm:$0xff]  ;;  %v379_v26 = vld [vmem:[#allocation7 + $0x10] sm:$0xff] }
  0x65   : > { %867 = vmatpush3.msra.mxu1 %v371_v7  ;;  %833 = vmatprep.subr.mxu0 %v388_v8  ;;  %v362_v25 = vld [vmem:[%s1452_s2 + $0x18] sm:$0xff]  ;;  %v361_v27 = vld [vmem:[%s1452_s2 + $0x10] sm:$0xff]  ;;  %v378_v28 = vld [vmem:[#allocation7 + $0x8] sm:$0xff] }
  0x66   : > { %868 = vmatprep.subr.mxu1 %v370_v9  ;;  %834 = vmatpush3.msra.mxu0 %v388_v8  ;;  %v360_v29 = vld [vmem:[%s1452_s2 + $0x8] sm:$0xff]  ;;  %v377_v30 = vld [vmem:[#allocation7] sm:$0xff]  ;;  %v569_v36 = vld [vmem:[%s1455_s5 + $0x78] sm:$0xff] }
  0x67   : > { %869 = vmatpush3.msra.mxu1 %v370_v9  ;;  %835 = vmatprep.subr.mxu0 %v387_v10  ;;  %v359_v31 = vld [vmem:[%s1452_s2] sm:$0xff]  ;;  %v376_v34 = vld [vmem:[%s309_s8 + $0x8] sm:$0xff]  ;;  %v568_v37 = vld [vmem:[%s1455_s5 + $0x70] sm:$0xff] }
  0x68   : > { %870 = vmatprep.subr.mxu1 %v369_v11  ;;  %836 = vmatpush3.msra.mxu0 %v387_v10  ;;  %v375_v32 = vld [vmem:[%s309_s8] sm:$0xff]  ;;  %v358_v35 = vld [vmem:[%s300_s21 + $0x8] sm:$0xff] }
  0x69   : > { %871 = vmatpush3.msra.mxu1 %v369_v11  ;;  %837 = vmatprep.subr.mxu0 %v386_v12  ;;  %v357_v33 = vld [vmem:[%s300_s21] sm:$0xff]  ;;  %v567_v38 = vld [vmem:[%s1455_s5 + $0x68] sm:$0xff]  ;;  %v565_v40 = vld [vmem:[%s1455_s5 + $0x58] sm:$0xff] }
  0x6a   : > { %872 = vmatprep.subr.mxu1 %v368_v13  ;;  %838 = vmatpush3.msra.mxu0 %v386_v12  ;;  %v566_v39 = vld [vmem:[%s1455_s5 + $0x60] sm:$0xff]  ;;  %v564_v41 = vld [vmem:[%s1455_s5 + $0x50] sm:$0xff]  ;;  %v563_v42 = vld [vmem:[%s1455_s5 + $0x48] sm:$0xff] }
  0x6b   : > { %873 = vmatpush3.msra.mxu1 %v368_v13  ;;  %839 = vmatprep.subr.mxu0 %v385_v14  ;;  %v562_v43 = vld [vmem:[%s1455_s5 + $0x40] sm:$0xff]  ;;  %v561_v44 = vld [vmem:[%s1455_s5 + $0x38] sm:$0xff]  ;;  %v560_v45 = vld [vmem:[%s1455_s5 + $0x30] sm:$0xff] }
  0x6c   : > { %874 = vmatprep.subr.mxu1 %v367_v15  ;;  %840 = vmatpush3.msra.mxu0 %v385_v14  ;;  %v559_v46 = vld [vmem:[%s1455_s5 + $0x28] sm:$0xff]  ;;  %v558_v47 = vld [vmem:[%s1455_s5 + $0x20] sm:$0xff]  ;;  %v557_v48 = vld [vmem:[%s1455_s5 + $0x18] sm:$0xff] }
  0x6d   : > { %875 = vmatpush3.msra.mxu1 %v367_v15  ;;  %841 = vmatprep.subr.mxu0 %v384_v16  ;;  %v556_v49 = vld [vmem:[%s1455_s5 + $0x10] sm:$0xff]  ;;  %v555_v50 = vld [vmem:[%s1455_s5 + $0x8] sm:$0xff]  ;;  %v554_v51 = vld [vmem:[%s1455_s5] sm:$0xff] }
  0x6e   : > { %876 = vmatprep.subr.mxu1 %v366_v17  ;;  %842 = vmatpush3.msra.mxu0 %v384_v16  ;;  %v766_v55 = vld [vmem:[%s1454_s4] ss:$0 sm:$0xff] }
  0x6f   : > { %877 = vmatpush3.msra.mxu1 %v366_v17  ;;  %843 = vmatprep.subr.mxu0 %v383_v18 }
  0x70   : > { %878 = vmatprep.subr.mxu1 %v365_v19  ;;  %844 = vmatpush3.msra.mxu0 %v383_v18 }
  0x71   : > { %879 = vmatpush3.msra.mxu1 %v365_v19  ;;  %845 = vmatprep.subr.mxu0 %v382_v20 }
  0x72   : > { %880 = vmatprep.subr.mxu1 %v364_v21  ;;  %846 = vmatpush3.msra.mxu0 %v382_v20 }
  0x73   : > { %881 = vmatpush3.msra.mxu1 %v364_v21  ;;  %847 = vmatprep.subr.mxu0 %v381_v22 }
  0x74   : > { %882 = vmatprep.subr.mxu1 %v363_v23  ;;  %848 = vmatpush3.msra.mxu0 %v381_v22 }
  0x75   : > { %883 = vmatpush3.msra.mxu1 %v363_v23  ;;  %849 = vmatprep.subr.mxu0 %v380_v24 }
  0x76   : > { %884 = vmatprep.subr.mxu1 %v362_v25  ;;  %850 = vmatpush3.msra.mxu0 %v380_v24 }
  0x77   : > { %885 = vmatpush3.msra.mxu1 %v362_v25  ;;  %851 = vmatprep.subr.mxu0 %v379_v26 }
  0x78   : > { %886 = vmatprep.subr.mxu1 %v361_v27  ;;  %852 = vmatpush3.msra.mxu0 %v379_v26 }
  0x79   : > { %887 = vmatpush3.msra.mxu1 %v361_v27  ;;  %853 = vmatprep.subr.mxu0 %v378_v28 }
  0x7a   : > { %888 = vmatprep.subr.mxu1 %v360_v29  ;;  %854 = vmatpush3.msra.mxu0 %v378_v28 }
  0x7b   : > { %889 = vmatpush3.msra.mxu1 %v360_v29  ;;  %855 = vmatprep.subr.mxu0 %v377_v30 }
  0x7c   : > { %890 = vmatprep.subr.mxu1 %v359_v31  ;;  %856 = vmatpush3.msra.mxu0 %v377_v30 }
  0x7d   : > { %857 = vmatprep.mubr.f32.mxu0 %v375_v32  ;;  %891 = vmatpush3.msra.mxu1 %v359_v31 }
  0x7e   : > { %892 = vmatprep.mubr.f32.mxu1 %v357_v33  ;;  %858 = vmatmul.mubr.f32.vlgmr.msra.gmra.mxu0 %v376_v34 }
  0x7f   : > { %893 = vmatmul.mubr.f32.vlgmr.msra.gmra.mxu1 %v358_v35  ;;  %895 = vmatprep.subr.mxu0 %v569_v36 }
  0x80   : > { %896 = vmatpush3.msra.mxu0 %v569_v36 }
  0x81   : > { %897 = vmatprep.subr.mxu0 %v568_v37 }
  0x82   : > { %898 = vmatpush3.msra.mxu0 %v568_v37 }
  0x83   : > { %899 = vmatprep.subr.mxu0 %v567_v38 }
  0x84   : > { %900 = vmatpush3.msra.mxu0 %v567_v38 }
  0x85   : > { %901 = vmatprep.subr.mxu0 %v566_v39 }
  0x86   : > { %902 = vmatpush3.msra.mxu0 %v566_v39 }
  0x87   : > { %903 = vmatprep.subr.mxu0 %v565_v40 }
  0x88   : > { %904 = vmatpush3.msra.mxu0 %v565_v40 }
  0x89   : > { %905 = vmatprep.subr.mxu0 %v564_v41 }
  0x8a   : > { %906 = vmatpush3.msra.mxu0 %v564_v41 }
  0x8b   : > { %907 = vmatprep.subr.mxu0 %v563_v42 }
  0x8c   : > { %908 = vmatpush3.msra.mxu0 %v563_v42 }
  0x8d   : > { %909 = vmatprep.subr.mxu0 %v562_v43 }
  0x8e   : > { %910 = vmatpush3.msra.mxu0 %v562_v43 }
  0x8f   : > { %911 = vmatprep.subr.mxu0 %v561_v44 }
  0x90   : > { %912 = vmatpush3.msra.mxu0 %v561_v44 }
  0x91   : > { %913 = vmatprep.subr.mxu0 %v560_v45 }
  0x92   : > { %914 = vmatpush3.msra.mxu0 %v560_v45 }
  0x93   : > { %915 = vmatprep.subr.mxu0 %v559_v46 }
  0x94   : > { %916 = vmatpush3.msra.mxu0 %v559_v46 }
  0x95   : > { %917 = vmatprep.subr.mxu0 %v558_v47 }
  0x96   : > { %918 = vmatpush3.msra.mxu0 %v558_v47 }
  0x97   : > { %919 = vmatprep.subr.mxu0 %v557_v48 }
  0x98   : > { %920 = vmatpush3.msra.mxu0 %v557_v48 }
  0x99   : > { %921 = vmatprep.subr.mxu0 %v556_v49 }
  0x9a   : > { %922 = vmatpush3.msra.mxu0 %v556_v49 }
  0x9b   : > { %923 = vmatprep.subr.mxu0 %v555_v50 }
  0x9c   : > { %924 = vmatpush3.msra.mxu0 %v555_v50 }
  0x9d   : > { %925 = vmatprep.subr.mxu0 %v554_v51 }
  0x9e   : > { %926 = vmatpush3.msra.mxu0 %v554_v51 }
 0x13e   : > { %v859_v52 = vpop.f32.mrf.mxu0 }
 0x13f   : > { %v894_v53 = vpop.f32.mrf.mxu1 }
 0x140   : > { %v540_v54 = vadd.f32 %v894_v53, %v859_v52  ;;  %v459_v56 = vpop.f32.mrf.mxu0 }
 0x141   : > { %v534_v57 = vpop.f32.mrf.mxu1 }
 0x142   : > { %v535_v58 = vadd.f32 %v534_v57, %v459_v56  ;;  %v551_v59 = vadd.f32 %v766_v55, %v540_v54 }
 0x144   : > { %v550_v60 = vadd.f32 %v766_v55, %v535_v58  ;;  %v553_v62 = vmax.f32 %v551_v59, 0.0 }
 0x146   : > { %v552_v61 = vmax.f32 %v550_v60, 0.0 }
 0x148   : > { %927 = vmatprep.mubr.f32.mxu0 %v552_v61 }
 0x149   : > { %928 = vmatmul.mubr.f32.vlgmr.msra.gmra.mxu0 %v553_v62 }
 0x209   : > { %v929_v63 = vpop.f32.mrf.mxu0 }
 0x20a   : > { %v644_v3 = vadd.f32 %v929_v63, %v571_v0 }
 0x20b   : > { %v638_v1 = vpop.f32.mrf.mxu0 }
 0x20c   : > { %v639_v2 = vadd.f32 %v638_v1, %v571_v0  ;;  %649 = vst.msk [vmem:[%s355_s19 + $0x8] sm:$0xff] %vm647_vm0, %v644_v3 }
 0x20e   : > { %648 = vst.msk [vmem:[%s355_s19] sm:$0xff] %vm647_vm0, %v639_v2 }
 0x20f PF: > { %p21_p6 = scmp.ge.s32.totalorder %s1205_s12, 6   ;;  %s1470_s26 = smov %s1103_s27 }
 0x210   : > { %s1471_s27 = smov %s1107_s28  ;;  %s1472_s28 = smov %s1225_s20 }
 0x211   : > { %s1473_s29 = smov %s1205_s12  ;;  %23 = sbr.rel (!%p21_p6) target bundleno = 7 (0x7), region = 105 }
 0x216   :  { %672 = vsyncpa [#allocation4], 1 }
 0x217   :  { %674 = vsyncpa [#allocation4 + $0x1], 1 }
 0x218   :  { %675 = vsyncpa [#allocation6], 1 }
 0x219   :  { %677 = vsyncpa [#allocation6 + $0x1], 1 }

</bundles_post_ra>
